<compile_context>
chip_gen: v7x
topology: tpu7x:2x2x1
jax: 0.10.0
libtpu: 0.0.40
codegen_flags: <defaults>
</compile_context>

<pallas_src>
import functools

import jax
import jax.numpy as jnp
from jax import lax
from jax.experimental import pallas as pl
from jax.experimental.pallas import tpu as pltpu


_ROW_BLOCK_CAP = 256  # selected-row tile per grid step (v5e/v6e friendly)


def _contrastive_loss_kernel(
    lhs_ref,   # (2*bm, D) bf16: [normalized em1 block ; normalized em2-tail block]
    r1t_ref,   # (D, m)    bf16: normalized em1, transposed (resident RHS)
    r2t_ref,   # (D, n)    bf16: normalized em2, transposed (resident RHS)
    out_ref,   # (bm, 1)   f32 : per selected-row loss contribution
    *, m, n, bm, inv_t):
  b = pl.program_id(0)
  inv_t = jnp.float32(inv_t)

  lhs = lhs_ref[...].astype(jnp.float32)                     # (2bm, D)

  # Positive logit (shared by the mirrored top/bottom rows): O(bm*D), f32.
  pos = jnp.sum(lhs[:bm] * lhs[bm:], axis=-1, keepdims=True) * inv_t   # (bm,1)

  # Fold 1/temperature into the (tiny) LHS; MXU operands in bf16, f32 acc.
  lhs_b = (lhs * inv_t).astype(jnp.bfloat16)                 # (2bm, D)
  s1 = jnp.dot(lhs_b, r1t_ref[...], preferred_element_type=jnp.float32)  # (2bm, m)
  s2 = jnp.dot(lhs_b, r2t_ref[...], preferred_element_type=jnp.float32)  # (2bm, n)

  # Index vectors: only (2bm,1) and (1,cols) iotas.
  rj = lax.broadcasted_iota(jnp.int32, (2 * bm, 1), 0)       # stacked row id
  is_top = rj < bm
  sel = b * bm + jnp.where(is_top, rj, rj - bm)              # selected-row id
  c1 = lax.broadcasted_iota(jnp.int32, (1, m), 1)            # em1 column id
  c2 = lax.broadcasted_iota(jnp.int32, (1, n), 1)            # em2 column id
  neg_big = jnp.float32(-1e30)

  # Top half (concat row i):     diagonal is em1 column i.
  s1 = jnp.where(is_top & (c1 == sel), neg_big, s1)
  # Bottom half (concat row n+i): diagonal is em2 column (n - m) + i.
  s2 = jnp.where((~is_top) & (c2 == sel + (n - m)), neg_big, s2)

  # Row-wise logsumexp over the union of the two column groups.
  mx = jnp.maximum(jnp.max(s1, axis=-1, keepdims=True),
                   jnp.max(s2, axis=-1, keepdims=True))
  ssum = (jnp.sum(jnp.exp(s1 - mx), axis=-1, keepdims=True)
          + jnp.sum(jnp.exp(s2 - mx), axis=-1, keepdims=True))
  lse = jnp.log(ssum) + mx                                   # (2bm, 1)

  # Combine mirrored halves; mask padded rows of the edge block.
  per_row = (lse[:bm] + lse[bm:]) - 2.0 * pos                # (bm, 1)
  valid = (b * bm + lax.broadcasted_iota(jnp.int32, (bm, 1), 0)) < m
  out_ref[...] = jnp.where(valid, per_row, 0.0)


def _pick_block(m, n, cap):
  bm = cap
  # Keep the per-step f32 logits (2 * (2bm) * (m+n) * 4 B live) modest.
  while bm > 64 and 2 * (2 * bm) * (m + n) * 4 > (12 << 20):
    bm //= 2
  return m if m <= bm else bm


def contrastive_loss(em1, em2, temperature, block_cap=_ROW_BLOCK_CAP):
  m, n = em1.shape[0], em2.shape[0]
  if m > n:
    em1, em2 = em2, em1
    m, n = n, m
  d = em1.shape[1]

  def _norm(x):  # matches F.normalize: x / max(||x||, 1e-12)
    x = x.astype(jnp.float32)
    return x * lax.rsqrt(jnp.maximum(jnp.sum(x * x, axis=-1, keepdims=True),
                                     jnp.float32(1e-24)))

  e1 = _norm(em1).astype(jnp.bfloat16)                       # (m, d)
  e2 = _norm(em2).astype(jnp.bfloat16)                       # (n, d)
  r1t = e1.T                                                 # (d, m) resident RHS
  r2t = e2.T                                                 # (d, n) resident RHS

  bm = _pick_block(m, n, block_cap)
  nb = pl.cdiv(m, bm)
  m_pad = nb * bm

  # Stacked, zero-padded LHS: rows [b*2bm, b*2bm+bm) = em1 block b,
  #                           rows [b*2bm+bm, (b+1)*2bm) = em2-tail block b.
  e2_tail = e2 if m == n else lax.slice_in_dim(e2, n - m, n, axis=0)
  e1p = jnp.zeros((m_pad, d), jnp.bfloat16).at[:m].set(e1)
  e2p = jnp.zeros((m_pad, d), jnp.bfloat16).at[:m].set(e2_tail)
  lhs = jnp.concatenate([e1p.reshape(nb, bm, d), e2p.reshape(nb, bm, d)],
                        axis=1).reshape(nb * 2 * bm, d)

  kernel = functools.partial(_contrastive_loss_kernel, m=m, n=n, bm=bm,
                             inv_t=1.0 / float(temperature))

  # VMEM budget (generous) clamped to 64 MiB so it is also safe on v7x.
  need = (2 * (m + n) * d * 2          # resident transposed RHS (x2 safety)
          + 4 * (2 * bm) * d * 2       # double-buffered LHS blocks
          + 6 * (2 * bm) * (m + n) * 4 # f32 logits + exp temporaries
          + 4 * bm * 4)
  vmem_limit = int(min(max(need + (4 << 20), 32 << 20), 64 << 20))

  grid_spec = pltpu.PrefetchScalarGridSpec(
      num_scalar_prefetch=0,
      grid=(nb,),
      in_specs=[
          pl.BlockSpec((2 * bm, d), lambda b: (b, 0)),            # stacked LHS
          pl.BlockSpec(memory_space=pltpu.MemorySpace.VMEM),      # r1t (resident)
          pl.BlockSpec(memory_space=pltpu.MemorySpace.VMEM),      # r2t (resident)
      ],
      out_specs=pl.BlockSpec((bm, 1), lambda b: (b, 0)),
  )

  partials = pl.pallas_call(
      kernel,
      out_shape=jax.ShapeDtypeStruct((m_pad, 1), jnp.float32),
      grid_spec=grid_spec,
      compiler_params=pltpu.CompilerParams(
          dimension_semantics=("parallel",),   # independent blocks -> dual-TC on v7x
          vmem_limit_bytes=vmem_limit,
      ),
  )(lhs, r1t, r2t)

  # Final mean over the 2m selected rows, applied once in JAX.
  return jnp.sum(partials) / jnp.float32(2 * m)


def _reference_loss(em1, em2, temperature):
  """Pure-JAX reference mirroring the PyTorch forward()."""
  m, n = em1.shape[0], em2.shape[0]
  if m > n:
    em1, em2 = em2, em1
    m, n = n, m
  emb = jnp.concatenate([em1, em2], axis=0).astype(jnp.float32)
  e = emb / jnp.maximum(jnp.linalg.norm(emb, axis=1, keepdims=True), 1e-12)
  sim = (e @ e.T) / temperature
  N = m + n
  idx = jnp.arange(N)
  sel = jnp.concatenate([idx[:m], idx[n:]])                  # selected rows
  pos_col = jnp.concatenate([idx[:m] + n, idx[n:] - n])      # their positives
  sim_sel = sim[sel]                                         # (2m, N)
  sim_sel = sim_sel.at[jnp.arange(2 * m), sel].set(-jnp.inf)  # drop diagonal
  lse = jax.scipy.special.logsumexp(sim_sel, axis=1)
  pos = sim[sel, pos_col]
  return jnp.mean(lse - pos)


if __name__ == "__main__":
  keys = jax.random.split(jax.random.PRNGKey(0), 8)
  temperature = 0.5
  # (m, n, d, block_cap) — block_cap=64 forces multi-block + partial edge block.
  cases = [
      (6, 10, 32, _ROW_BLOCK_CAP),    # m < n, single block
      (10, 6, 32, _ROW_BLOCK_CAP),    # exercises the m > n swap
      (130, 150, 32, 64),             # multi-block tiling with partial edge block
      (300, 340, 32, _ROW_BLOCK_CAP), # multi-block at the default 256-row tile
  ]
  for idx, (m, n, d, cap) in enumerate(cases):
    k1, k2 = keys[2 * idx], keys[2 * idx + 1]
    em1 = jax.random.normal(k1, (m, d), dtype=jnp.float32)
    em2 = jax.random.normal(k2, (n, d), dtype=jnp.float32)

    loss = contrastive_loss(em1, em2, temperature, block_cap=cap)
    jax.block_until_ready(loss)

    ref = _reference_loss(em1, em2, temperature)
    # bf16 MXU operands (f32 accumulation) -> relaxed tolerance vs f32 reference.
    assert jnp.allclose(loss, ref, atol=3e-2, rtol=3e-2), (m, n, loss, ref)

  print("KERNEL_OK")
</pallas_src>

<mosaic_0001>
module attributes {stable_mosaic.version = 11 : i64} {
  func.func @_contrastive_loss_kernel(%arg0: i32, %arg1: memref<12x32xbf16, #tpu.memory_space<vmem>>, %arg2: memref<32x6xbf16, #tpu.memory_space<vmem>>, %arg3: memref<32x10xbf16, #tpu.memory_space<vmem>>, %arg4: memref<6x1xf32, #tpu.memory_space<vmem>>) attributes {dimension_semantics = [#tpu.dimension_semantics<parallel>], iteration_bounds = array<i64: 1>, scalar_prefetch = 0 : i64, scratch_operands = 0 : i64, tpu.core_type = #tpu.core_type<tc>, window_params = [{transform_indices = @transform_0, window_bounds = array<i64: 12, 32>}, {pipeline_mode = #tpu.pipeline_mode<synchronous>, transform_indices = @transform_1, window_bounds = array<i64: 32, 6>}, {pipeline_mode = #tpu.pipeline_mode<synchronous>, transform_indices = @transform_2, window_bounds = array<i64: 32, 10>}, {transform_indices = @transform_3, window_bounds = array<i64: 6, 1>}]} {
    %c0 = arith.constant 0 : index
    %c0_0 = arith.constant 0 : index
    %0 = vector.load %arg1[%c0, %c0_0] : memref<12x32xbf16, #tpu.memory_space<vmem>>, vector<12x32xbf16>
    %1 = arith.extf %0 : vector<12x32xbf16> to vector<12x32xf32>
    %2 = vector.extract_strided_slice %1 {offsets = [0, 0], sizes = [6, 32], strides = [1, 1]} : vector<12x32xf32> to vector<6x32xf32>
    %3 = vector.extract_strided_slice %1 {offsets = [6, 0], sizes = [6, 32], strides = [1, 1]} : vector<12x32xf32> to vector<6x32xf32>
    %4 = arith.mulf %2, %3 : vector<6x32xf32>
    %cst = arith.constant dense<0.000000e+00> : vector<6xf32>
    %5 = vector.multi_reduction <add>, %4, %cst [1] : vector<6x32xf32> to vector<6xf32>
    %6 = vector.shape_cast %5 : vector<6xf32> to vector<6x1xf32>
    %cst_1 = arith.constant 2.000000e+00 : f32
    %7 = vector.broadcast %cst_1 : f32 to vector<6x1xf32>
    %8 = arith.mulf %6, %7 : vector<6x1xf32>
    %cst_2 = arith.constant 2.000000e+00 : f32
    %9 = vector.broadcast %cst_2 : f32 to vector<12x32xf32>
    %10 = arith.mulf %1, %9 : vector<12x32xf32>
    %11 = arith.truncf %10 : vector<12x32xf32> to vector<12x32xbf16>
    %c0_3 = arith.constant 0 : index
    %c0_4 = arith.constant 0 : index
    %12 = vector.load %arg2[%c0_3, %c0_4] : memref<32x6xbf16, #tpu.memory_space<vmem>>, vector<32x6xbf16>
    %cst_5 = arith.constant dense<0.000000e+00> : vector<12x6xf32>
    %13 = tpu.matmul %11, %12, %cst_5 {dimension_numbers = #tpu.dot_dimension_numbers<[1], [0], [0], [1], [0, 0, 1, 1], [], []>} : vector<12x32xbf16>, vector<32x6xbf16>, vector<12x6xf32> -> vector<12x6xf32>
    %c0_6 = arith.constant 0 : index
    %c0_7 = arith.constant 0 : index
    %14 = vector.load %arg3[%c0_6, %c0_7] : memref<32x10xbf16, #tpu.memory_space<vmem>>, vector<32x10xbf16>
    %cst_8 = arith.constant dense<0.000000e+00> : vector<12x10xf32>
    %15 = tpu.matmul %11, %14, %cst_8 {dimension_numbers = #tpu.dot_dimension_numbers<[1], [0], [0], [1], [0, 0, 1, 1], [], []>} : vector<12x32xbf16>, vector<32x10xbf16>, vector<12x10xf32> -> vector<12x10xf32>
    %16 = tpu.iota {dimensions = array<i32: 0>} : vector<12x1xi32>
    %c6_i32 = arith.constant 6 : i32
    %17 = vector.broadcast %c6_i32 : i32 to vector<12x1xi32>
    %18 = arith.cmpi slt, %16, %17 : vector<12x1xi32>
    %c6_i32_9 = arith.constant 6 : i32
    %19 = arith.muli %arg0, %c6_i32_9 : i32
    %c6_i32_10 = arith.constant 6 : i32
    %20 = vector.broadcast %c6_i32_10 : i32 to vector<12x1xi32>
    %21 = arith.subi %16, %20 : vector<12x1xi32>
    %22 = arith.select %18, %16, %21 : vector<12x1xi1>, vector<12x1xi32>
    %23 = vector.broadcast %19 : i32 to vector<12x1xi32>
    %24 = arith.addi %23, %22 : vector<12x1xi32>
    %25 = tpu.iota {dimensions = array<i32: 1>} : vector<1x6xi32>
    %26 = tpu.iota {dimensions = array<i32: 1>} : vector<1x10xi32>
    %27 = vector.broadcast %25 : vector<1x6xi32> to vector<12x6xi32>
    %28 = vector.broadcast %24 : vector<12x1xi32> to vector<12x6xi32>
    %29 = arith.cmpi eq, %27, %28 : vector<12x6xi32>
    %30 = vector.broadcast %18 : vector<12x1xi1> to vector<12x6xi1>
    %31 = arith.andi %30, %29 : vector<12x6xi1>
    %cst_11 = arith.constant -1.000000e+30 : f32
    %32 = vector.broadcast %cst_11 : f32 to vector<12x6xf32>
    %33 = arith.select %31, %32, %13 : vector<12x6xi1>, vector<12x6xf32>
    %cst_12 = arith.constant dense<true> : vector<12x1xi1>
    %34 = arith.xori %18, %cst_12 : vector<12x1xi1>
    %c4_i32 = arith.constant 4 : i32
    %35 = vector.broadcast %c4_i32 : i32 to vector<12x1xi32>
    %36 = arith.addi %24, %35 : vector<12x1xi32>
    %37 = vector.broadcast %26 : vector<1x10xi32> to vector<12x10xi32>
    %38 = vector.broadcast %36 : vector<12x1xi32> to vector<12x10xi32>
    %39 = arith.cmpi eq, %37, %38 : vector<12x10xi32>
    %40 = vector.broadcast %34 : vector<12x1xi1> to vector<12x10xi1>
    %41 = arith.andi %40, %39 : vector<12x10xi1>
    %cst_13 = arith.constant -1.000000e+30 : f32
    %42 = vector.broadcast %cst_13 : f32 to vector<12x10xf32>
    %43 = arith.select %41, %42, %15 : vector<12x10xi1>, vector<12x10xf32>
    %cst_14 = arith.constant dense<0xFF800000> : vector<12xf32>
    %44 = vector.multi_reduction <maximumf>, %33, %cst_14 [1] : vector<12x6xf32> to vector<12xf32>
    %45 = vector.shape_cast %44 : vector<12xf32> to vector<12x1xf32>
    %cst_15 = arith.constant dense<0xFF800000> : vector<12xf32>
    %46 = vector.multi_reduction <maximumf>, %43, %cst_15 [1] : vector<12x10xf32> to vector<12xf32>
    %47 = vector.shape_cast %46 : vector<12xf32> to vector<12x1xf32>
    %48 = arith.maximumf %45, %47 : vector<12x1xf32>
    %49 = vector.broadcast %48 : vector<12x1xf32> to vector<12x6xf32>
    %50 = arith.subf %33, %49 : vector<12x6xf32>
    %51 = math.exp %50 : vector<12x6xf32>
    %cst_16 = arith.constant dense<0.000000e+00> : vector<12xf32>
    %52 = vector.multi_reduction <add>, %51, %cst_16 [1] : vector<12x6xf32> to vector<12xf32>
    %53 = vector.shape_cast %52 : vector<12xf32> to vector<12x1xf32>
    %54 = vector.broadcast %48 : vector<12x1xf32> to vector<12x10xf32>
    %55 = arith.subf %43, %54 : vector<12x10xf32>
    %56 = math.exp %55 : vector<12x10xf32>
    %cst_17 = arith.constant dense<0.000000e+00> : vector<12xf32>
    %57 = vector.multi_reduction <add>, %56, %cst_17 [1] : vector<12x10xf32> to vector<12xf32>
    %58 = vector.shape_cast %57 : vector<12xf32> to vector<12x1xf32>
    %59 = arith.addf %53, %58 : vector<12x1xf32>
    %60 = math.log %59 : vector<12x1xf32>
    %61 = arith.addf %60, %48 : vector<12x1xf32>
    %62 = vector.extract_strided_slice %61 {offsets = [0, 0], sizes = [6, 1], strides = [1, 1]} : vector<12x1xf32> to vector<6x1xf32>
    %63 = vector.extract_strided_slice %61 {offsets = [6, 0], sizes = [6, 1], strides = [1, 1]} : vector<12x1xf32> to vector<6x1xf32>
    %64 = arith.addf %62, %63 : vector<6x1xf32>
    %cst_18 = arith.constant 2.000000e+00 : f32
    %65 = vector.broadcast %cst_18 : f32 to vector<6x1xf32>
    %66 = arith.mulf %65, %8 : vector<6x1xf32>
    %67 = arith.subf %64, %66 : vector<6x1xf32>
    %c6_i32_19 = arith.constant 6 : i32
    %68 = arith.muli %arg0, %c6_i32_19 : i32
    %69 = tpu.iota {dimensions = array<i32: 0>} : vector<6x1xi32>
    %70 = vector.broadcast %68 : i32 to vector<6x1xi32>
    %71 = arith.addi %70, %69 : vector<6x1xi32>
    %c6_i32_20 = arith.constant 6 : i32
    %72 = vector.broadcast %c6_i32_20 : i32 to vector<6x1xi32>
    %73 = arith.cmpi slt, %71, %72 : vector<6x1xi32>
    %cst_21 = arith.constant 0.000000e+00 : f32
    %74 = vector.broadcast %cst_21 : f32 to vector<6x1xf32>
    %75 = arith.select %73, %67, %74 : vector<6x1xi1>, vector<6x1xf32>
    %c0_22 = arith.constant 0 : index
    %c0_23 = arith.constant 0 : index
    %76 = vector.load %arg4[%c0_22, %c0_23] : memref<6x1xf32, #tpu.memory_space<vmem>>, vector<6x1xf32>
    tpu.vector_store %arg4[%c0_22, %c0_23], %75 {strides = array<i32>} : memref<6x1xf32, #tpu.memory_space<vmem>>, vector<6x1xf32>,
    return
  }
  func.func @transform_0(%arg0: i32) -> (i32, i32) {
    %c0_i32 = arith.constant 0 : i32
    %c0_i32_0 = arith.constant 0 : i32
    return %arg0, %c0_i32 : i32, i32
  }
  func.func @transform_1(%arg0: i32) -> (i32, i32) {
    %c0_i32 = arith.constant 0 : i32
    %c0_i32_0 = arith.constant 0 : i32
    %c0_i32_1 = arith.constant 0 : i32
    return %c0_i32, %c0_i32_0 : i32, i32
  }
  func.func @transform_2(%arg0: i32) -> (i32, i32) {
    %c0_i32 = arith.constant 0 : i32
    %c0_i32_0 = arith.constant 0 : i32
    %c0_i32_1 = arith.constant 0 : i32
    return %c0_i32, %c0_i32_0 : i32, i32
  }
  func.func @transform_3(%arg0: i32) -> (i32, i32) {
    %c0_i32 = arith.constant 0 : i32
    %c0_i32_0 = arith.constant 0 : i32
    return %arg0, %c0_i32 : i32, i32
  }
}

</mosaic_0001>

<bundles_post_ra>
// kernel: tpu_custom_call.1
= control target key start
LH: loop header
LB: loop body
LE: loop exit
PB: predicated region body
PF: predicated region fallthrough
CT: control target
= control target key end

     0   :  { %v309_v0 = vmov 0.0   ;;  %vm310_vm0 = vmmov 0   ;;  %vm51_vm1 = vcmask 261120   ;;  %v153_v12 = vlaneseq  ;;  %s389_s1 = inlined_call_operand.vmem [shape: bf16[32,6], index: 1, kind: input, shape index: {}]   ;;  %s390_s2 = inlined_call_operand.vmem [shape: bf16[32,10], index: 2, kind: input, shape index: {}]   ;;  %s391_s0 = inlined_call_operand.vmem [shape: bf16[12,32], index: 0, kind: input, shape index: {}]   ;;  %s392_s3 = inlined_call_operand.vmem [shape: f32[6,1], index: 3, kind: output, shape index: {}]  }
   0x1   :  { %274 = vmatprep.subr.bf16.mxu0 %v309_v0  ;;  %282 = vmatprep.subr.bf16.mxu1 %v309_v0  ;;  %v293_v1 = vld [vmem:[%s389_s1] sm:$0xff]   ;;  %v295_v3 = vld [vmem:[%s389_s1 + $0x8] sm:$0xff]   ;;  %vm311_vm4 = vmmov 1   ;;  %vm200_vm9 = vcmask 80896   ;;  %vm192_vm10 = vcmask 48128   ;;  %vm204_vm12 = vcmask 76800  }
   0x2   :  { %v294_v2 = vld [vmem:[%s390_s2] sm:$0xff]   ;;  %278 = vmatprep.mubr.msk.bf16.mxu0 %vm310_vm0, %v309_v0  ;;  %286 = vmatprep.mubr.msk.bf16.mxu1 %vm310_vm0, %v309_v0  ;;  %v296_v4 = vld [vmem:[%s390_s2 + $0x8] sm:$0xff]   ;;  %v358_v13 = vshrl.u32 %v153_v12, 7  ;;  %v167_v17 = vand.u32 127, %v153_v12  ;;  %vm196_vm13 = vcmask 44032   ;;  %vm21_vm14 = vcmask 1041408  }
   0x3   :  { %275 = vmatpush3.bf16.msra.mxu0 %v293_v1  ;;  %283 = vmatpush3.bf16.msra.mxu1 %v294_v2  ;;  %v15_v5 = vld [vmem:[%s391_s0] sm:$0xf]  ;;  %v350_v6 = vld [vmem:[%s391_s0 + $0x4] sm:$0x3]  ;;  %vm27_vm15 = vcmask 259072   ;;  %vm254_vm0 = vcmask 5120  }
   0x4   :  { %276 = vmatprep.subr.bf16.mxu0 %v309_v0  ;;  %284 = vmatprep.subr.bf16.mxu1 %v309_v0  ;;  %v352_v7 = vunpack.c.l.bf16 %v15_v5  ;;  %v18_v8 = vunpack.c.l.bf16 %v350_v6  ;;  %v266_v14 = vadd.s32 4294967290, %v358_v13  ;;  %vm156_vm2 = vcmp.lt.s32.totalorder %v358_v13, 6 }
   0x5   :  { %v155_v16 = vadd.s32 8, %v358_v13  ;;  %vm178_vm5 = vmxor %vm156_vm2, %vm311_vm4 }
   0x6   :  { %v32_v9 = vmul.f32 2.0, %v352_v7  ;;  %v33_v10 = vmul.f32 2.0, %v18_v8  ;;  %v161_v15 = vsel %vm156_vm2, %v358_v13, %v266_v14  ;;  %v22_v50 = vrot.slane %v352_v7, 6 }
   0x7   :  { %277 = vmatpush3.bf16.msra.mxu0 %v295_v3  ;;  %285 = vmatpush3.bf16.msra.mxu1 %v296_v4  ;;  %v180_v18 = vadd.s32 4, %v161_v15  ;;  %v267_v19 = vadd.s32 4294967290, %v155_v16  ;;  %vm168_vm3 = vcmp.eq.s32.totalorder %v167_v17, %v161_v15  ;;  %v23_v51 = vrot.slane %v18_v8, 6 }
   0x8   :  { %v34_v11 = vpack.c.bf16 %v33_v10, %v32_v9  ;;  %vm174_vm7 = vmand %vm156_vm2, %vm168_vm3 }
   0x9   :  { %vm182_vm6 = vcmp.eq.s32.totalorder %v167_v17, %v180_v18  ;;  %v181_v20 = vadd.s32 4, %v267_v19  ;;  %v24_v53 = vsel %vm21_vm14, %v22_v50, %v23_v51 }
   0xa   :  { %279 = vmatmul.mubr.msk.bf16.vlgmr.msra.gmra.mrb[0].mxu0 %vm51_vm1, %v34_v11  ;;  %287 = vmatmul.mubr.msk.bf16.vlgmr.msra.gmra.mrb[0].mxu1 %vm51_vm1, %v34_v11  ;;  %vm188_vm8 = vmand %vm178_vm5, %vm182_vm6  ;;  %v26_v56 = vmul.f32 %v24_v53, %v352_v7 }
   0xb   :  { %vm183_vm11 = vcmp.eq.s32.totalorder %v167_v17, %v181_v20 }
   0xc   :  { %v28_v61 = vsel %vm27_vm15, %v26_v56, 0.0 }
  0xdd   :  { %v89_v21 = vpop.f32.mrb[0].mxu0  ;;  %v146_v22 = vpop.f32.mrb[0].mxu1 }
  0xde   :  { %v176_v23 = vsel %vm174_vm7, -1e+30, %v89_v21  ;;  %v190_v24 = vsel %vm188_vm8, -1e+30, %v146_v22  ;;  %v280_v25 = vpop.f32.mrb[1].mxu0  ;;  %v288_v26 = vpop.f32.mrb[1].mxu1 }
  0xdf   :  { %v92_v27 = vpop.f32.mrb[2].mxu0  ;;  %v149_v28 = vpop.f32.mrb[2].mxu1  ;;  %v201_v29 = vsel %vm200_vm9, %v190_v24, -inf  ;;  %v193_v30 = vsel %vm192_vm10, %v176_v23, -inf }
  0xe0   :  { %v191_v31 = vsel %vm183_vm11, -1e+30, %v149_v28  ;;  %202 = vmax.xlane.f32.xlu1 %v201_v29  ;;  %v289_v32 = vpop.f32.mrb[3].mxu1  ;;  %194 = vmax.xlane.f32.xlu0 %v193_v30  ;;  %v281_v33 = vpop.f32.mrb[3].mxu0  ;;  %v197_v35 = vsel %vm196_vm13, %v92_v27, -inf }
  0xe1   :  { %v205_v34 = vsel %vm204_vm12, %v191_v31, -inf }
  0xe4   :  { %206 = vmax.xlane.f32.xlu1 %v205_v34  ;;  %198 = vmax.xlane.f32.xlu0 %v197_v35 }
 0x16d   :  { %v203_v36 = vpop.xlane.xlu1 %202  ;;  %v195_v37 = vpop.xlane.xlu0 %194 }
 0x16e   :  { %v208_v38 = vmax.f32 %v195_v37, %v203_v36 }
 0x170   :  { %v210_v39 = vsub.f32 %v176_v23, %v208_v38  ;;  %v222_v40 = vsub.f32 %v190_v24, %v208_v38 }
 0x171   :  { %v207_v41 = vpop.xlane.xlu1 %206  ;;  %v199_v42 = vpop.xlane.xlu0 %198 }
 0x172   :  { %v212_v43 = vmul.f32 1.442695, %v210_v39  ;;  %v224_v44 = vmul.f32 1.442695, %v222_v40  ;;  %v209_v45 = vmax.f32 %v199_v42, %v207_v41 }
 0x174   :  { %297 = vpow2.f32 %v212_v43  ;;  %v211_v46 = vsub.f32 %v92_v27, %v209_v45  ;;  %v223_v47 = vsub.f32 %v191_v31, %v209_v45 }
 0x175   :  { %299 = vpow2.f32 %v224_v44 }
 0x176   :  { %v214_v48 = vmul.f32 1.442695, %v211_v46  ;;  %v226_v49 = vmul.f32 1.442695, %v223_v47 }
 0x178   :  { %301 = vpow2.f32 %v214_v48 }
 0x179   :  { %303 = vpow2.f32 %v226_v49 }
 0x17e   :  { %v298_v52 = vpop.eup %297 }
 0x17f   :  { %v216_v54 = vsel %vm192_vm10, %v298_v52, 0.0  ;;  %v300_v55 = vpop.eup %299 }
 0x180   :  { %217 = vadd.xlane.f32.xlu0 %v216_v54  ;;  %v228_v58 = vsel %vm200_vm9, %v300_v55, 0.0 }
 0x182   :  { %v302_v57 = vpop.eup %301 }
 0x183   :  { %v219_v59 = vsel %vm196_vm13, %v302_v57, 0.0  ;;  %v304_v60 = vpop.eup %303 }
 0x184   :  { %229 = vadd.xlane.f32.xlu0 %v228_v58  ;;  %220 = vadd.xlane.f32.xlu1 %v219_v59  ;;  %v231_v62 = vsel %vm204_vm12, %v304_v60, 0.0 }
 0x188   :  { %232 = vadd.xlane.f32.xlu1 %v231_v62  ;;  %29 = vadd.xlane.f32.xlu0 %v28_v61 }
 0x20d   :  { %v218_v63 = vpop.xlane.xlu0 %217 }
 0x211   :  { %v221_v0 = vpop.xlane.xlu1 %220  ;;  %v230_v1 = vpop.xlane.xlu0 %229 }
 0x212   :  { %v234_v2 = vadd.f32 %v230_v1, %v218_v63 }
 0x214   :  { %305 = vlog2.f32 %v234_v2 }
 0x215   :  { %v233_v3 = vpop.xlane.xlu1 %232  ;;  %v30_v7 = vpop.xlane.xlu0 %29 }
 0x216   :  { %v235_v4 = vadd.f32 %v233_v3, %v221_v0  ;;  %v31_v11 = vmul.f32 2.0, %v30_v7 }
 0x218   :  { %307 = vlog2.f32 %v235_v4  ;;  %v249_v16 = vmul.f32 2.0, %v31_v11 }
 0x21e   :  { %v306_v5 = vpop.eup %305 }
 0x21f   :  { %v237_v6 = vmul.f32 0.6931472, %v306_v5 }
 0x221   :  { %v240_v9 = vadd.f32 %v237_v6, %v208_v38 }
 0x222   :  { %v308_v8 = vpop.eup %307 }
 0x223   :  { %v239_v10 = vmul.f32 0.6931472, %v308_v8  ;;  %v244_v14 = vrot.slane %v240_v9, 6 }
 0x225   :  { %v241_v12 = vadd.f32 %v239_v10, %v209_v45 }
 0x227   :  { %v245_v15 = vrot.slane %v241_v12, 6 }
 0x229   :  { %v246_v17 = vsel %vm21_vm14, %v244_v14, %v245_v15 }
 0x22a   :  { %v248_v18 = vadd.f32 %v246_v17, %v240_v9 }
 0x22c   :  { %v250_v19 = vsub.f32 %v248_v18, %v249_v16 }
 0x22e   :  { %v253_v20 = vsel %vm156_vm2, %v250_v19, 0.0 }
 0x22f   :  { %255 = vst.msk [vmem:[%s392_s3] sm:$0x3f] %vm254_vm0, %v253_v20 }

</bundles_post_ra>
